<compile_context>
chip_gen: v7x
topology: tpu7x:2x2x1
jax: 0.10.0
libtpu: 0.0.40
codegen_flags: <defaults>
</compile_context>

<pallas_src>
import functools

import jax
import jax.numpy as jnp
from jax.experimental import pallas as pl
from jax.experimental.pallas import tpu as pltpu


def _softadapt_kernel(losses_ref, out_ref, *, beta, loss_weighted, n_valid):
    losses = losses_ref[...]                       # (1, P) f32, lane-dense
    # PyTorch assigns prev_losses = losses before subtracting, so s == 0.
    s = losses - losses                            # constant zero (kept for clarity)
    t = jnp.exp(beta * s)                          # == 1 everywhere
    num = losses * t if loss_weighted else t       # (1, P)
    # Mask padded lanes so they do not contribute to the normalization sum.
    lane = jax.lax.broadcasted_iota(jnp.int32, num.shape, dimension=1)
    num = jnp.where(lane < n_valid, num, 0.0)
    denom = jnp.sum(num)                           # scalar reduction (XLU)
    out_ref[...] = num / denom                     # exact divide (matches 1e-6 tol)


def softadapt(losses, beta=0.0, loss_weighted=False):
    """losses: 1-D f32 array of shape (N,). Returns new_lambdas of shape (N,)."""
    losses = jnp.asarray(losses, jnp.float32).reshape(-1)
    n = losses.shape[0]
    # Lane-dense padded slab: (1, P) with P a multiple of 128.
    p = ((n + 127) // 128) * 128
    x = jnp.zeros((1, p), jnp.float32).at[0, :n].set(losses)

    kernel = functools.partial(
        _softadapt_kernel,
        beta=float(beta),
        loss_weighted=bool(loss_weighted),
        n_valid=n,
    )

    # Grid-less call: single DMA-in / compute / DMA-out, whole arrays in VMEM.
    out = pl.pallas_call(
        kernel,
        out_shape=jax.ShapeDtypeStruct((1, p), jnp.float32),
        in_specs=[pl.BlockSpec(memory_space=pltpu.MemorySpace.VMEM)],
        out_specs=pl.BlockSpec(memory_space=pltpu.MemorySpace.VMEM),
    )(x)
    return out[0, :n]


def _reference(losses, beta=0.0, loss_weighted=False):
    prev = losses                      # same assignment order as PyTorch
    s = losses - prev
    t = jnp.exp(beta * s)
    num = losses * t if loss_weighted else t
    return num / jnp.sum(num)


if __name__ == "__main__":
    key = jax.random.PRNGKey(0)
    n_losses = 8
    # Positive synthetic loss values (as real training losses would be).
    losses = jax.random.uniform(key, (n_losses,), jnp.float32, 0.1, 2.0)

    # Default configuration: beta=0.0, loss_weighted=False (uniform output).
    out = softadapt(losses, beta=0.0, loss_weighted=False)
    jax.block_until_ready(out)
    ref = _reference(losses, beta=0.0, loss_weighted=False)
    assert jnp.allclose(out, ref, rtol=1e-6, atol=1e-6), (out, ref)

    # Also exercise the loss_weighted branch (and a nonzero beta) for coverage.
    out_w = softadapt(losses, beta=0.5, loss_weighted=True)
    jax.block_until_ready(out_w)
    ref_w = _reference(losses, beta=0.5, loss_weighted=True)
    assert jnp.allclose(out_w, ref_w, rtol=1e-6, atol=1e-6), (out_w, ref_w)

    print("KERNEL_OK")
</pallas_src>

<mosaic_0001>
module attributes {stable_mosaic.version = 11 : i64} {
  func.func @_softadapt_kernel(%arg0: memref<1x128xf32, #tpu.memory_space<vmem>>, %arg1: memref<1x128xf32, #tpu.memory_space<vmem>>) attributes {dimension_semantics = [], scalar_prefetch = 0 : i64, scratch_operands = 0 : i64, tpu.core_type = #tpu.core_type<tc>} {
    %c0 = arith.constant 0 : index
    %c0_0 = arith.constant 0 : index
    %0 = vector.load %arg0[%c0, %c0_0] : memref<1x128xf32, #tpu.memory_space<vmem>>, vector<1x128xf32>
    %1 = arith.subf %0, %0 : vector<1x128xf32>
    %cst = arith.constant 0.000000e+00 : f32
    %2 = vector.broadcast %cst : f32 to vector<1x128xf32>
    %3 = arith.mulf %2, %1 : vector<1x128xf32>
    %4 = math.exp %3 : vector<1x128xf32>
    %5 = tpu.iota {dimensions = array<i32: 1>} : vector<1x128xi32>
    %c8_i32 = arith.constant 8 : i32
    %6 = vector.broadcast %c8_i32 : i32 to vector<1x128xi32>
    %7 = arith.cmpi slt, %5, %6 : vector<1x128xi32>
    %cst_1 = arith.constant 0.000000e+00 : f32
    %8 = vector.broadcast %cst_1 : f32 to vector<1x128xf32>
    %9 = arith.select %7, %4, %8 : vector<1x128xi1>, vector<1x128xf32>
    %10 = vector.shape_cast %9 : vector<1x128xf32> to vector<1x1x128xf32>
    %cst_2 = arith.constant dense<0.000000e+00> : vector<1xf32>
    %11 = vector.multi_reduction <add>, %10, %cst_2 [1, 2] : vector<1x1x128xf32> to vector<1xf32>
    %12 = vector.shape_cast %11 : vector<1xf32> to vector<1x1x1xf32>
    %13 = vector.extract %12[0, 0, 0] : f32 from vector<1x1x1xf32>
    %14 = vector.broadcast %13 : f32 to vector<1x128xf32>
    %15 = arith.divf %9, %14 : vector<1x128xf32>
    %c0_3 = arith.constant 0 : index
    %c0_4 = arith.constant 0 : index
    %16 = vector.load %arg1[%c0_3, %c0_4] : memref<1x128xf32, #tpu.memory_space<vmem>>, vector<1x128xf32>
    tpu.vector_store %arg1[%c0_3, %c0_4], %15 {strides = array<i32>} : memref<1x128xf32, #tpu.memory_space<vmem>>, vector<1x128xf32>,
    return
  }
}

</mosaic_0001>

<bundles_post_ra>
// kernel: tpu_custom_call.1
= control target key start
LH: loop header
LB: loop body
LE: loop exit
PB: predicated region body
PF: predicated region fallthrough
CT: control target
= control target key end

     0   :  { %6 = vsyncpa [#allocation3], 0  ;;  %s152_s0 = inlined_call_operand.hbm [shape: f32[1,128], index: 0, kind: input, shape index: {}]   ;;  %s153_s1 = inlined_call_operand.hbm [shape: f32[1,128], index: 1, kind: output, shape index: {}]  }
   0x1   :  { %7 = vsyncpa [#allocation4], 0  ;;  %s116_s6 = smov [#allocation2]   ;;  %s68_s10 = scalar_lea.hbm %s152_s0, 16 }
   0x2   :  { %s14_s7 = sshll.u32 %s116_s6, 4  ;;  %p69_p0 = scmp.ne.s32.totalorder %s152_s0, %s68_s10  ;;  %s15_s7 = int_to_ptr.vmem [resolvable:$true] %s14_s7 }
   0x3   :  { %p72_p1 = scmp.lt.u32.totalorder %s68_s10, %s152_s0 }
   0x5   :  { %p74_p2 = pnand %p72_p1, %p69_p0 }
   0x7   :  { %77 = shalt.err (!%p74_p2)
}
   0x8   :  { %s78_s15 = scalar_lea.vmem %s15_s7, 16  ;;  %s82_s16 = scalar_lea.vmem %s15_s7, 32 }
   0x9   :  { %p79_p3 = scmp.ne.s32.totalorder %s15_s7, %s78_s15  ;;  %p83_p4 = scmp.lt.s32.totalorder %s15_s7, %s15_s7 }
   0xa   :  { %p84_p5 = scmp.lt.s32.totalorder %s82_s16, %s78_s15 }
   0xc   :  { %p85_p6 = por %p84_p5, %p83_p4 }
   0xe   :  { %p86_p7 = pnand %p85_p6, %p79_p3 }
  0x10   :  { %89 = shalt.err (!%p86_p7)
}
  0x11   :  { %17 = dma.hbm_to_vmem [thread:$0]  %s152_s0, 16, %s15_s7, [#allocation3]  }
  0x12   :  { %112 = dma.done.wait [#allocation3], 16  }
  0x13   :  { %113 = vsyncadd [#allocation3], 4294967280  ;;  %v21_v0 = vld [vmem:[#allocation2] sm:$0x1]  ;;  %v26_v4 = vlaneseq  ;;  %vm30_vm1 = vcmask 1040384   ;;  %s117_s19 = smov [#allocation5]  }
  0x14   :  { %v22_v1 = vsub.f32 %v21_v0, %v21_v0  ;;  %s51_s20 = sshll.u32 %s117_s19, 4  ;;  %s52_s20 = int_to_ptr.vmem [resolvable:$true] %s51_s20 }
  0x15   :  { %v27_v5 = vand.u32 127, %v26_v4  ;;  %s90_s21 = scalar_lea.vmem %s52_s20, 16  ;;  %s94_s22 = scalar_lea.vmem %s52_s20, 32 }
  0x16   :  { %v23_v2 = vmul.f32 0.0, %v22_v1  ;;  %p91_p8 = scmp.ne.s32.totalorder %s52_s20, %s90_s21  ;;  %p95_p9 = scmp.lt.s32.totalorder %s52_s20, %s52_s20 }
  0x17   :  { %vm28_vm0 = vcmp.lt.s32.totalorder %v27_v5, 8  ;;  %p96_p10 = scmp.lt.s32.totalorder %s94_s22, %s90_s21 }
  0x18   :  { %v24_v3 = vmul.f32 1.442695, %v23_v2 }
  0x19   :  { %p97_p11 = por %p96_p10, %p95_p9 }
  0x1a   :  { %64 = vpow2.f32 %v24_v3 }
  0x1b   :  { %p98_p12 = pnand %p97_p11, %p91_p8 }
  0x24   :  { %v65_v6 = vpop.eup %64 }
  0x25   :  { %v29_v7 = vsel %vm28_vm0, %v65_v6, 0.0 }
  0x26   :  { %v31_v8 = vsel %vm30_vm1, %v29_v7, 0.0 }
  0x27   :  { %32 = vadd.xlane.f32.xlu0 %v31_v8 }
  0xb4   :  { %v33_v9 = vpop.xlane.xlu0 %32 }
  0xb5   :  { %v34_v10 = vrot.slane %v33_v9, 4 }
  0xb7   :  { %v35_v11 = vadd.f32 %v34_v10, %v33_v9 }
  0xb9   :  { %v36_v12 = vrot.slane %v35_v11, 2 }
  0xbb   :  { %v37_v13 = vadd.f32 %v36_v12, %v35_v11 }
  0xbd   :  { %v38_v14 = vrot.slane %v37_v13, 1 }
  0xbf   :  { %v39_v15 = vadd.f32 %v38_v14, %v37_v13 }
  0xc1   :  { %60 = vpush %v39_v15 }
  0xf2   :  { %s61_s0 = spop %60 }
  0xf3   :  { %v41_v16 = vstv %s61_s0 }
  0xf4   :  { %66 = vrcp.f32 %v41_v16 }
  0xfe   :  { %v67_v17 = vpop.eup %66 }
  0xff   :  { %v43_v18 = vmul.f32 %v67_v17, %v29_v7 }
 0x101   :  { %44 = vst [vmem:[#allocation5] sm:$0x1] %v43_v18 }
 0x102   :  { %101 = shalt.err (!%p98_p12)
}
 0x103   :  { %s102_s25 = scalar_lea.hbm %s153_s1, 16 }
 0x104   :  { %p103_p13 = scmp.ne.s32.totalorder %s153_s1, %s102_s25  ;;  %p106_p0 = scmp.lt.u32.totalorder %s102_s25, %s153_s1 }
 0x106   :  { %p108_p1 = pnand %p106_p0, %p103_p13 }
 0x108   :  { %111 = shalt.err (!%p108_p1)
}
 0x109   :  { %54 = dma.vmem_to_hbm [thread:$0]  %s52_s20, 16, %s153_s1, [#allocation4]  }
 0x10a   :  { %114 = dma.done.wait [#allocation4], 16  }
 0x10b   :  { %115 = vsyncadd [#allocation4], 4294967280 }
 0x10c   :  { %58 = vsyncpa [#allocation3], 1 }
 0x10d   :  { %59 = vsyncpa [#allocation4], 1 }

</bundles_post_ra>
